<compile_context>
chip_gen: v7x
topology: tpu7x:2x2x1
jax: 0.10.0
libtpu: 0.0.40
codegen_flags: <defaults>
</compile_context>

<pallas_src>
import jax
import jax.numpy as jnp
from jax.experimental import pallas as pl
from jax.experimental.pallas import tpu as pltpu

IGNORE_INDEX = -100
SMOOTH = 1e-12


def _round_up(a, b):
    return ((a + b - 1) // b) * b


def _loss_kernel(x_ref, t_ref, out_ref,
                 inter_acc, x2_acc, ohc_acc, lse_acc):
    # x_ref: (1, C, T) logits (any float dtype); t_ref: (1, 1, T) int32 targets.
    h = pl.program_id(1)
    n_h = pl.num_programs(1)

    @pl.when(h == 0)
    def _init():
        inter_acc[...] = jnp.zeros_like(inter_acc)
        x2_acc[...] = jnp.zeros_like(x2_acc)
        ohc_acc[...] = jnp.zeros_like(ohc_acc)
        lse_acc[...] = jnp.zeros_like(lse_acc)

    x = x_ref[0].astype(jnp.float32)            # (C, T)
    t = t_ref[0]                                # (1, T) int32
    C = x.shape[0]

    valid = t != IGNORE_INDEX                   # (1, T) bool
    valid_f = valid.astype(jnp.float32)         # (1, T)
    t_safe = jnp.where(valid, t, 0)             # (1, T)

    # Boolean one-hot (never materialized as a separate f32 buffer).
    cls_ids = jax.lax.broadcasted_iota(jnp.int32, x.shape, 0)
    eq_valid = jnp.logical_and(cls_ids == t_safe, valid)   # (C, T) bool

    xv = jnp.where(valid, x, 0.0)               # x * valid      (C, T)
    xov = jnp.where(eq_valid, xv, 0.0)          # x * onehot * valid (C, T)

    # ---- cross entropy partial: sum over valid pixels of logsumexp_c(x) ----
    # (the "- x[target]" part equals -sum_c(intersection_c); recovered at finalize)
    m = jnp.max(x, axis=0, keepdims=True)                               # (1, T)
    lse = m + jnp.log(jnp.sum(jnp.exp(x - m), axis=0, keepdims=True))   # (1, T)
    lse_acc[...] = lse_acc[...] + jnp.sum(lse * valid_f)

    # ---- dice partial sums (lane-axis reductions; onehot^2 == onehot) ----
    inter_acc[...] = inter_acc[...] + jnp.sum(xov, axis=1, keepdims=True)            # (C, 1)
    x2_acc[...] = x2_acc[...] + jnp.sum(xv * xv, axis=1, keepdims=True)              # (C, 1)
    ohc_acc[...] = ohc_acc[...] + jnp.sum(eq_valid.astype(jnp.float32),
                                          axis=1, keepdims=True)                     # (C, 1)

    @pl.when(h == n_h - 1)
    def _finalize():
        inter = inter_acc[...]                                              # (C, 1)
        dice_c = 2.0 * inter / (x2_acc[...] + ohc_acc[...] + SMOOTH)        # (C, 1)
        dice_mean = jnp.sum(dice_c) * (1.0 / C)
        ce_sum = lse_acc[...] - jnp.sum(inter)      # sum(lse*valid) - sum(x[target]*valid)
        cnt = jnp.sum(ohc_acc[...])                 # valid-pixel count (targets in [0, C))
        rows = jax.lax.broadcasted_iota(jnp.int32, (8, 128), 0)
        vals = jnp.where(rows == 0, dice_mean,
               jnp.where(rows == 1, ce_sum,
               jnp.where(rows == 2, cnt, 0.0)))
        out_ref[0] = vals   # row 0: dice mean, row 1: CE sum, row 2: valid count


def multi_classes_dice_bce_loss(inputs, targets, classes, seg_weight):
    """inputs: (B, C, H, W) float logits; targets: (B, H, W) int labels;
    seg_weight: (B,) float. Returns a scalar loss matching the PyTorch forward."""
    B, C, H, W = inputs.shape
    assert C == classes
    HW = H * W

    # Pixel-axis tile: multiple of 128 lanes, sized so one logits block is ~2 MiB of
    # f32 (double-buffered inputs + streamed elementwise temps stay comfortably inside
    # scoped VMEM on v5e / v6e / v7x), clamped to [512, 32768] lanes.
    budget_elems = 512 * 1024
    tile_hw = (budget_elems // max(C, 1)) // 128 * 128
    tile_hw = max(512, min(tile_hw, 32768))
    tile_hw = min(tile_hw, _round_up(HW, 128))
    hw_pad = _round_up(HW, tile_hw)
    num_tiles = hw_pad // tile_hw

    x = inputs.reshape(B, C, HW)                     # keep native dtype (bf16 OK); cast in-kernel
    t = targets.reshape(B, 1, HW).astype(jnp.int32)
    if hw_pad != HW:
        x = jnp.pad(x, ((0, 0), (0, 0), (0, hw_pad - HW)))
        t = jnp.pad(t, ((0, 0), (0, 0), (0, hw_pad - HW)),
                    constant_values=IGNORE_INDEX)    # padded pixels are ignored everywhere

    grid_spec = pltpu.PrefetchScalarGridSpec(
        num_scalar_prefetch=0,
        grid=(B, num_tiles),                         # HW (reduction) axis last
        in_specs=[
            pl.BlockSpec((1, C, tile_hw), lambda b, h: (b, 0, h)),
            pl.BlockSpec((1, 1, tile_hw), lambda b, h: (b, 0, h)),
        ],
        out_specs=pl.BlockSpec((1, 8, 128), lambda b, h: (b, 0, 0)),
        scratch_shapes=[
            pltpu.VMEM((C, 1), jnp.float32),   # dice intersection per class
            pltpu.VMEM((C, 1), jnp.float32),   # sum x^2 * valid per class
            pltpu.VMEM((C, 1), jnp.float32),   # sum onehot * valid per class
            pltpu.VMEM((1, 1), jnp.float32),   # sum logsumexp * valid
        ],
    )
    out = pl.pallas_call(
        _loss_kernel,
        out_shape=jax.ShapeDtypeStruct((B, 8, 128), jnp.float32),
        grid_spec=grid_spec,
        compiler_params=pltpu.CompilerParams(
            dimension_semantics=("parallel", "arbitrary"),
            vmem_limit_bytes=48 * 1024 * 1024,
        ),
    )(x, t)

    dice = out[:, 0, 0]     # per-sample dice mean over classes
    ce_sum = out[:, 1, 0]   # per-sample CE sum over valid pixels
    ce_cnt = out[:, 2, 0]   # per-sample valid pixel count

    # inputs[seg_weight != 0] batch filtering, done as a mask (static shapes in JAX).
    mask = (seg_weight != 0).astype(jnp.float32)
    dice_loss = jnp.sum((1.0 - dice) * mask) / jnp.sum(mask)      # (1 - dice).mean() over selected
    ce = jnp.sum(ce_sum * mask) / jnp.sum(ce_cnt * mask)          # pooled CE mean over valid pixels
    return jnp.nansum(dice_loss) + jnp.nansum(ce)


if __name__ == "__main__":
    key = jax.random.PRNGKey(0)
    k1, k2 = jax.random.split(key)

    B, C, H, W = 2, 4, 16, 16
    inputs = jax.random.normal(k1, (B, C, H, W), dtype=jnp.float32)
    targets = jax.random.randint(k2, (B, H, W), 0, C, dtype=jnp.int32)
    seg_weight = jnp.array([1.0, 0.0], dtype=jnp.float32)  # second batch element filtered out

    loss = jax.jit(multi_classes_dice_bce_loss, static_argnums=2)(
        inputs, targets, C, seg_weight)
    jax.block_until_ready(loss)
    print("KERNEL_OK")
</pallas_src>

<mosaic_0001>
module attributes {stable_mosaic.version = 11 : i64} {
  func.func @_loss_kernel(%arg0: i32, %arg1: i32, %arg2: memref<1x4x256xf32, #tpu.memory_space<vmem>>, %arg3: memref<1x1x256xi32, #tpu.memory_space<vmem>>, %arg4: memref<1x8x128xf32, #tpu.memory_space<vmem>>, %arg5: memref<4x1xf32, #tpu.memory_space<vmem>>, %arg6: memref<4x1xf32, #tpu.memory_space<vmem>>, %arg7: memref<4x1xf32, #tpu.memory_space<vmem>>, %arg8: memref<1x1xf32, #tpu.memory_space<vmem>>) attributes {dimension_semantics = [#tpu.dimension_semantics<parallel>, #tpu.dimension_semantics<arbitrary>], iteration_bounds = array<i64: 2, 1>, scalar_prefetch = 0 : i64, scratch_operands = 4 : i64, tpu.core_type = #tpu.core_type<tc>, window_params = [{transform_indices = @transform_0, window_bounds = array<i64: 1, 4, 256>}, {transform_indices = @transform_1, window_bounds = array<i64: 1, 1, 256>}, {transform_indices = @transform_2, window_bounds = array<i64: 1, 8, 128>}]} {
    %c0_i32 = arith.constant 0 : i32
    %0 = arith.cmpi eq, %arg1, %c0_i32 : i32
    %1 = arith.extui %0 : i1 to i32
    %c0_i32_0 = arith.constant 0 : i32
    %2 = arith.cmpi ne, %1, %c0_i32_0 : i32
    scf.if %2 {
      %cst_32 = arith.constant 0.000000e+00 : f32
      %63 = vector.broadcast %cst_32 : f32 to vector<4x1xf32>
      %c0_33 = arith.constant 0 : index
      %c0_34 = arith.constant 0 : index
      %64 = vector.load %arg5[%c0_33, %c0_34] : memref<4x1xf32, #tpu.memory_space<vmem>>, vector<4x1xf32>
      tpu.vector_store %arg5[%c0_33, %c0_34], %63 {strides = array<i32>} : memref<4x1xf32, #tpu.memory_space<vmem>>, vector<4x1xf32>,
      %cst_35 = arith.constant 0.000000e+00 : f32
      %65 = vector.broadcast %cst_35 : f32 to vector<4x1xf32>
      %c0_36 = arith.constant 0 : index
      %c0_37 = arith.constant 0 : index
      %66 = vector.load %arg6[%c0_36, %c0_37] : memref<4x1xf32, #tpu.memory_space<vmem>>, vector<4x1xf32>
      tpu.vector_store %arg6[%c0_36, %c0_37], %65 {strides = array<i32>} : memref<4x1xf32, #tpu.memory_space<vmem>>, vector<4x1xf32>,
      %cst_38 = arith.constant 0.000000e+00 : f32
      %67 = vector.broadcast %cst_38 : f32 to vector<4x1xf32>
      %c0_39 = arith.constant 0 : index
      %c0_40 = arith.constant 0 : index
      %68 = vector.load %arg7[%c0_39, %c0_40] : memref<4x1xf32, #tpu.memory_space<vmem>>, vector<4x1xf32>
      tpu.vector_store %arg7[%c0_39, %c0_40], %67 {strides = array<i32>} : memref<4x1xf32, #tpu.memory_space<vmem>>, vector<4x1xf32>,
      %cst_41 = arith.constant 0.000000e+00 : f32
      %69 = vector.broadcast %cst_41 : f32 to vector<1x1xf32>
      %c0_42 = arith.constant 0 : index
      %c0_43 = arith.constant 0 : index
      %70 = vector.load %arg8[%c0_42, %c0_43] : memref<1x1xf32, #tpu.memory_space<vmem>>, vector<1x1xf32>
      tpu.vector_store %arg8[%c0_42, %c0_43], %69 {strides = array<i32>} : memref<1x1xf32, #tpu.memory_space<vmem>>, vector<1x1xf32>,
    } else {
    }
    %c0 = arith.constant 0 : index
    %c0_1 = arith.constant 0 : index
    %c0_2 = arith.constant 0 : index
    %3 = vector.load %arg2[%c0, %c0_1, %c0_2] : memref<1x4x256xf32, #tpu.memory_space<vmem>>, vector<1x4x256xf32>
    %4 = vector.shape_cast %3 : vector<1x4x256xf32> to vector<4x256xf32>
    %c0_3 = arith.constant 0 : index
    %c0_4 = arith.constant 0 : index
    %c0_5 = arith.constant 0 : index
    %5 = vector.load %arg3[%c0_3, %c0_4, %c0_5] : memref<1x1x256xi32, #tpu.memory_space<vmem>>, vector<1x1x256xi32>
    %6 = vector.shape_cast %5 : vector<1x1x256xi32> to vector<1x256xi32>
    %c-100_i32 = arith.constant -100 : i32
    %7 = vector.broadcast %c-100_i32 : i32 to vector<1x256xi32>
    %8 = arith.cmpi ne, %6, %7 : vector<1x256xi32>
    %9 = arith.extui %8 : vector<1x256xi1> to vector<1x256xi32>
    %10 = arith.sitofp %9 : vector<1x256xi32> to vector<1x256xf32>
    %c0_i32_6 = arith.constant 0 : i32
    %11 = vector.broadcast %c0_i32_6 : i32 to vector<1x256xi32>
    %12 = arith.select %8, %6, %11 : vector<1x256xi1>, vector<1x256xi32>
    %13 = tpu.iota {dimensions = array<i32: 0>} : vector<4x256xi32>
    %14 = vector.broadcast %12 : vector<1x256xi32> to vector<4x256xi32>
    %15 = arith.cmpi eq, %13, %14 : vector<4x256xi32>
    %16 = vector.broadcast %8 : vector<1x256xi1> to vector<4x256xi1>
    %17 = arith.andi %15, %16 : vector<4x256xi1>
    %cst = arith.constant 0.000000e+00 : f32
    %18 = vector.shape_cast %8 : vector<1x256xi1> to vector<1x256xi1>
    %19 = vector.broadcast %18 : vector<1x256xi1> to vector<4x256xi1>
    %20 = vector.broadcast %cst : f32 to vector<4x256xf32>
    %21 = arith.select %19, %4, %20 : vector<4x256xi1>, vector<4x256xf32>
    %cst_7 = arith.constant 0.000000e+00 : f32
    %22 = vector.broadcast %cst_7 : f32 to vector<4x256xf32>
    %23 = arith.select %17, %21, %22 : vector<4x256xi1>, vector<4x256xf32>
    %cst_8 = arith.constant dense<0xFF800000> : vector<256xf32>
    %24 = vector.multi_reduction <maximumf>, %4, %cst_8 [0] : vector<4x256xf32> to vector<256xf32>
    %25 = vector.shape_cast %24 : vector<256xf32> to vector<1x256xf32>
    %26 = vector.broadcast %25 : vector<1x256xf32> to vector<4x256xf32>
    %27 = arith.subf %4, %26 : vector<4x256xf32>
    %28 = math.exp %27 : vector<4x256xf32>
    %cst_9 = arith.constant dense<0.000000e+00> : vector<256xf32>
    %29 = vector.multi_reduction <add>, %28, %cst_9 [0] : vector<4x256xf32> to vector<256xf32>
    %30 = vector.shape_cast %29 : vector<256xf32> to vector<1x256xf32>
    %31 = math.log %30 : vector<1x256xf32>
    %32 = arith.addf %25, %31 : vector<1x256xf32>
    %c0_10 = arith.constant 0 : index
    %c0_11 = arith.constant 0 : index
    %33 = vector.load %arg8[%c0_10, %c0_11] : memref<1x1xf32, #tpu.memory_space<vmem>>, vector<1x1xf32>
    %34 = arith.mulf %32, %10 : vector<1x256xf32>
    %35 = vector.shape_cast %34 : vector<1x256xf32> to vector<1x1x256xf32>
    %cst_12 = arith.constant dense<0.000000e+00> : vector<1xf32>
    %36 = vector.multi_reduction <add>, %35, %cst_12 [1, 2] : vector<1x1x256xf32> to vector<1xf32>
    %37 = vector.shape_cast %36 : vector<1xf32> to vector<1x1x1xf32>
    %38 = vector.extract %37[0, 0, 0] : f32 from vector<1x1x1xf32>
    %39 = vector.broadcast %38 : f32 to vector<1x1xf32>
    %40 = arith.addf %33, %39 : vector<1x1xf32>
    %c0_13 = arith.constant 0 : index
    %c0_14 = arith.constant 0 : index
    %41 = vector.load %arg8[%c0_13, %c0_14] : memref<1x1xf32, #tpu.memory_space<vmem>>, vector<1x1xf32>
    tpu.vector_store %arg8[%c0_13, %c0_14], %40 {strides = array<i32>} : memref<1x1xf32, #tpu.memory_space<vmem>>, vector<1x1xf32>,
    %c0_15 = arith.constant 0 : index
    %c0_16 = arith.constant 0 : index
    %42 = vector.load %arg5[%c0_15, %c0_16] : memref<4x1xf32, #tpu.memory_space<vmem>>, vector<4x1xf32>
    %cst_17 = arith.constant dense<0.000000e+00> : vector<4xf32>
    %43 = vector.multi_reduction <add>, %23, %cst_17 [1] : vector<4x256xf32> to vector<4xf32>
    %44 = vector.shape_cast %43 : vector<4xf32> to vector<4x1xf32>
    %45 = arith.addf %42, %44 : vector<4x1xf32>
    %c0_18 = arith.constant 0 : index
    %c0_19 = arith.constant 0 : index
    %46 = vector.load %arg5[%c0_18, %c0_19] : memref<4x1xf32, #tpu.memory_space<vmem>>, vector<4x1xf32>
    tpu.vector_store %arg5[%c0_18, %c0_19], %45 {strides = array<i32>} : memref<4x1xf32, #tpu.memory_space<vmem>>, vector<4x1xf32>,
    %c0_20 = arith.constant 0 : index
    %c0_21 = arith.constant 0 : index
    %47 = vector.load %arg6[%c0_20, %c0_21] : memref<4x1xf32, #tpu.memory_space<vmem>>, vector<4x1xf32>
    %48 = arith.mulf %21, %21 : vector<4x256xf32>
    %cst_22 = arith.constant dense<0.000000e+00> : vector<4xf32>
    %49 = vector.multi_reduction <add>, %48, %cst_22 [1] : vector<4x256xf32> to vector<4xf32>
    %50 = vector.shape_cast %49 : vector<4xf32> to vector<4x1xf32>
    %51 = arith.addf %47, %50 : vector<4x1xf32>
    %c0_23 = arith.constant 0 : index
    %c0_24 = arith.constant 0 : index
    %52 = vector.load %arg6[%c0_23, %c0_24] : memref<4x1xf32, #tpu.memory_space<vmem>>, vector<4x1xf32>
    tpu.vector_store %arg6[%c0_23, %c0_24], %51 {strides = array<i32>} : memref<4x1xf32, #tpu.memory_space<vmem>>, vector<4x1xf32>,
    %c0_25 = arith.constant 0 : index
    %c0_26 = arith.constant 0 : index
    %53 = vector.load %arg7[%c0_25, %c0_26] : memref<4x1xf32, #tpu.memory_space<vmem>>, vector<4x1xf32>
    %54 = arith.extui %17 : vector<4x256xi1> to vector<4x256xi32>
    %55 = arith.sitofp %54 : vector<4x256xi32> to vector<4x256xf32>
    %cst_27 = arith.constant dense<0.000000e+00> : vector<4xf32>
    %56 = vector.multi_reduction <add>, %55, %cst_27 [1] : vector<4x256xf32> to vector<4xf32>
    %57 = vector.shape_cast %56 : vector<4xf32> to vector<4x1xf32>
    %58 = arith.addf %53, %57 : vector<4x1xf32>
    %c0_28 = arith.constant 0 : index
    %c0_29 = arith.constant 0 : index
    %59 = vector.load %arg7[%c0_28, %c0_29] : memref<4x1xf32, #tpu.memory_space<vmem>>, vector<4x1xf32>
    tpu.vector_store %arg7[%c0_28, %c0_29], %58 {strides = array<i32>} : memref<4x1xf32, #tpu.memory_space<vmem>>, vector<4x1xf32>,
    %c0_i32_30 = arith.constant 0 : i32
    %60 = arith.cmpi eq, %arg1, %c0_i32_30 : i32
    %61 = arith.extui %60 : i1 to i32
    %c0_i32_31 = arith.constant 0 : i32
    %62 = arith.cmpi ne, %61, %c0_i32_31 : i32
    scf.if %62 {
      %c0_32 = arith.constant 0 : index
      %c0_33 = arith.constant 0 : index
      %63 = vector.load %arg5[%c0_32, %c0_33] : memref<4x1xf32, #tpu.memory_space<vmem>>, vector<4x1xf32>
      %cst_34 = arith.constant 2.000000e+00 : f32
      %64 = vector.broadcast %cst_34 : f32 to vector<4x1xf32>
      %65 = arith.mulf %64, %63 : vector<4x1xf32>
      %c0_35 = arith.constant 0 : index
      %c0_36 = arith.constant 0 : index
      %66 = vector.load %arg6[%c0_35, %c0_36] : memref<4x1xf32, #tpu.memory_space<vmem>>, vector<4x1xf32>
      %c0_37 = arith.constant 0 : index
      %c0_38 = arith.constant 0 : index
      %67 = vector.load %arg7[%c0_37, %c0_38] : memref<4x1xf32, #tpu.memory_space<vmem>>, vector<4x1xf32>
      %68 = arith.addf %66, %67 : vector<4x1xf32>
      %cst_39 = arith.constant 9.99999996E-13 : f32
      %69 = vector.broadcast %cst_39 : f32 to vector<4x1xf32>
      %70 = arith.addf %68, %69 : vector<4x1xf32>
      %71 = arith.divf %65, %70 : vector<4x1xf32>
      %72 = vector.shape_cast %71 : vector<4x1xf32> to vector<1x4x1xf32>
      %cst_40 = arith.constant dense<0.000000e+00> : vector<1xf32>
      %73 = vector.multi_reduction <add>, %72, %cst_40 [1, 2] : vector<1x4x1xf32> to vector<1xf32>
      %74 = vector.shape_cast %73 : vector<1xf32> to vector<1x1x1xf32>
      %75 = vector.extract %74[0, 0, 0] : f32 from vector<1x1x1xf32>
      %cst_41 = arith.constant 2.500000e-01 : f32
      %76 = arith.mulf %75, %cst_41 : f32
      %c0_42 = arith.constant 0 : index
      %c0_43 = arith.constant 0 : index
      %77 = vector.load %arg8[%c0_42, %c0_43] : memref<1x1xf32, #tpu.memory_space<vmem>>, vector<1x1xf32>
      %78 = vector.shape_cast %63 : vector<4x1xf32> to vector<1x4x1xf32>
      %cst_44 = arith.constant dense<0.000000e+00> : vector<1xf32>
      %79 = vector.multi_reduction <add>, %78, %cst_44 [1, 2] : vector<1x4x1xf32> to vector<1xf32>
      %80 = vector.shape_cast %79 : vector<1xf32> to vector<1x1x1xf32>
      %81 = vector.extract %80[0, 0, 0] : f32 from vector<1x1x1xf32>
      %82 = vector.broadcast %81 : f32 to vector<1x1xf32>
      %83 = arith.subf %77, %82 : vector<1x1xf32>
      %c0_45 = arith.constant 0 : index
      %c0_46 = arith.constant 0 : index
      %84 = vector.load %arg7[%c0_45, %c0_46] : memref<4x1xf32, #tpu.memory_space<vmem>>, vector<4x1xf32>
      %85 = vector.shape_cast %84 : vector<4x1xf32> to vector<1x4x1xf32>
      %cst_47 = arith.constant dense<0.000000e+00> : vector<1xf32>
      %86 = vector.multi_reduction <add>, %85, %cst_47 [1, 2] : vector<1x4x1xf32> to vector<1xf32>
      %87 = vector.shape_cast %86 : vector<1xf32> to vector<1x1x1xf32>
      %88 = vector.extract %87[0, 0, 0] : f32 from vector<1x1x1xf32>
      %89 = tpu.iota {dimensions = array<i32: 0>} : vector<8x128xi32>
      %c0_i32_48 = arith.constant 0 : i32
      %90 = vector.broadcast %c0_i32_48 : i32 to vector<8x128xi32>
      %91 = arith.cmpi eq, %89, %90 : vector<8x128xi32>
      %c1_i32 = arith.constant 1 : i32
      %92 = vector.broadcast %c1_i32 : i32 to vector<8x128xi32>
      %93 = arith.cmpi eq, %89, %92 : vector<8x128xi32>
      %c2_i32 = arith.constant 2 : i32
      %94 = vector.broadcast %c2_i32 : i32 to vector<8x128xi32>
      %95 = arith.cmpi eq, %89, %94 : vector<8x128xi32>
      %cst_49 = arith.constant 0.000000e+00 : f32
      %96 = vector.broadcast %88 : f32 to vector<8x128xf32>
      %97 = vector.broadcast %cst_49 : f32 to vector<8x128xf32>
      %98 = arith.select %95, %96, %97 : vector<8x128xi1>, vector<8x128xf32>
      %99 = vector.shape_cast %83 : vector<1x1xf32> to vector<1x1xf32>
      %100 = vector.broadcast %99 : vector<1x1xf32> to vector<8x128xf32>
      %101 = arith.select %93, %100, %98 : vector<8x128xi1>, vector<8x128xf32>
      %102 = vector.broadcast %76 : f32 to vector<8x128xf32>
      %103 = arith.select %91, %102, %101 : vector<8x128xi1>, vector<8x128xf32>
      %c0_50 = arith.constant 0 : index
      %c0_51 = arith.constant 0 : index
      %c0_52 = arith.constant 0 : index
      %104 = vector.load %arg4[%c0_50, %c0_51, %c0_52] : memref<1x8x128xf32, #tpu.memory_space<vmem>>, vector<1x8x128xf32>
      %105 = vector.shape_cast %104 : vector<1x8x128xf32> to vector<8x128xf32>
      %106 = vector.shape_cast %103 : vector<8x128xf32> to vector<1x8x128xf32>
      tpu.vector_store %arg4[%c0_50, %c0_51, %c0_52], %106 {strides = array<i32>} : memref<1x8x128xf32, #tpu.memory_space<vmem>>, vector<1x8x128xf32>,
    } else {
    }
    return
  }
  func.func @transform_0(%arg0: i32, %arg1: i32) -> (i32, i32, i32) {
    %c0_i32 = arith.constant 0 : i32
    %c0_i32_0 = arith.constant 0 : i32
    return %arg0, %c0_i32, %arg1 : i32, i32, i32
  }
  func.func @transform_1(%arg0: i32, %arg1: i32) -> (i32, i32, i32) {
    %c0_i32 = arith.constant 0 : i32
    %c0_i32_0 = arith.constant 0 : i32
    return %arg0, %c0_i32, %arg1 : i32, i32, i32
  }
  func.func @transform_2(%arg0: i32, %arg1: i32) -> (i32, i32, i32) {
    %c0_i32 = arith.constant 0 : i32
    %c0_i32_0 = arith.constant 0 : i32
    %c0_i32_1 = arith.constant 0 : i32
    return %arg0, %c0_i32, %c0_i32_0 : i32, i32, i32
  }
}

</mosaic_0001>

<bundles_post_ra>
// kernel: multi_classes_dice_bce_loss.1
= control target key start
LH: loop header
LB: loop body
LE: loop exit
PB: predicated region body
PF: predicated region fallthrough
CT: control target
= control target key end

     0   :  { %s603_s9 = smov 0   ;;  %s605_s10 = smov 0   ;;  %s711_s0 = inlined_call_operand.vmem [shape: f32[2,4,256], index: 0, kind: input, shape index: {}]   ;;  %s712_s1 = inlined_call_operand.vmem [shape: s32[2,1,256], index: 1, kind: input, shape index: {}]   ;;  %s713_s2 = inlined_call_operand.vmem [shape: f32[2,8,128], index: 2, kind: output, shape index: {}]  }
   0x1   :  { %s607_s11 = smov 0  }
   0x2 LB: > { %s24_s12 = sadd.s32 1, %s580_s10  ;;  %p506_p0 = scmp.ge.s32.totalorder %s584_s11, 1  ;;  %s584_s11 = sphi %s607_s11, %s12_s11   ;;  %s580_s10 = sphi %s605_s10, %s717_s10   ;;  %s576_s9 = sphi %s603_s9, %s716_s9  }
   0x3   : > { %p26_p1 = scmp.ge.s32.totalorder %s24_s12, 2  ;;  %p147_p2 = scmp.lt.s32.totalorder %s584_s11, 3 }
   0x5   : > { %s719_s12 = smov (%p26_p1, %s24_s12), 0  ;;  %p148_p3 = pnand %p506_p0, %p147_p2 }
   0x6   : > { %p181_p4 = scmp.lt.s32.totalorder (!%p148_p3), %s576_s9, 1  ;;  %v219_v0 = vlaneseq (!%p148_p3)  ;;  %vm207_vm0 = vcmask (!%p148_p3), 3072   ;;  %v586_v1 = vmov (!%p148_p3), 0   ;;  %v587_v3 = vmov (!%p148_p3), 0.0  }
   0x7   : > { %151 = sbr.rel (%p148_p3) target bundleno = 545 (0x221), region = 28  ;;  %551 = vset.pattern.permute.xlu1 (!%p148_p3), %v586_v1  ;;  %552 = vset.pattern.permute.xlu0 (!%p148_p3), %v586_v1  ;;  %209 = vst.msk [vmem:[#allocation3] sm:$0xf] (!%p148_p3), %vm207_vm0, %v587_v3  ;;  %208 = vst.msk [vmem:[#allocation2] sm:$0xf] (!%p148_p3), %vm207_vm0, %v587_v3  ;;  %vm250_vm1 = vcmask (!%p148_p3), 1043456  }
   0x8   : > { %v623_v2 = vshrl.u32 (!%p148_p3), %v219_v0, 7  ;;  %210 = vst.msk [vmem:[#allocation4] sm:$0xf] (!%p148_p3), %vm207_vm0, %v587_v3  ;;  %vm309_vm9 = vcmask (!%p148_p3), 1040384   ;;  %vm211_vm10 = vcmask (!%p148_p3), 0  }
   0x9   : > { %212 = vst.msk [vmem:[#allocation5] sm:$0x1] (!%p148_p3), %vm211_vm10, %v587_v3 }
   0xa   : > { %v642_v4 = vsub.s32 (!%p148_p3), 0, %v623_v2  ;;  %v645_v5 = vsub.s32 (!%p148_p3), 1, %v623_v2  ;;  %vm404_vm11 = vcmp.eq.s32.totalorder (!%p148_p3), %v623_v2, 2  ;;  %vm403_vm12 = vcmp.eq.s32.totalorder (!%p148_p3), %v623_v2, 1 }
   0xb   : > { %vm402_vm13 = vcmp.eq.s32.totalorder (!%p148_p3), %v623_v2, 0 }
   0xe   : > { %s721_s9 = smov (!%p181_p4, %s576_s9), 1 }
   0xf   : > { %s516_s13 = sshll.u32 %s721_s9, 3  ;;  %s509_s14 = sshll.u32 %s721_s9, 1 }
  0x10   : > { %s188_s17 = scalar_lea.vmem %s711_s0, %s516_s13  ;;  %s197_s20 = scalar_lea.vmem %s712_s1, %s509_s14 }
  0x11   : > { %v213_v6 = vld [vmem:[%s188_s17] sm:$0xff]  ;;  %s202_s28 = scalar_lea.vmem %s713_s2, %s516_s13 }
  0x12   : > { %v647_v7 = vld [vmem:[%s197_s20] sm:$0x3]  ;;  %v244_v8 = vcombine.high %v213_v6, %v213_v6  ;;  %v251_v9 = vsel %vm250_vm1, %v213_v6, -inf }
  0x13   : > { %vm215_vm2 = vcmp.ne.s32.totalorder %v647_v7, 4294967196  ;;  %v252_v11 = vrot.slane %v251_v9, 4 }
  0x14   : > { %v216_v10 = vsel %vm215_vm2, 1, %v586_v1  ;;  %v218_v12 = vsel %vm215_vm2, %v647_v7, 0  ;;  %v258_v15 = vsel %vm250_vm1, %v244_v8, -inf  ;;  %v326_v7 = vld [vmem:[#allocation2] sm:$0xf] }
  0x15   : > { %v234_v13 = vrot.slane %v216_v10, %v642_v4  ;;  %v238_v14 = vrot.slane %v216_v10, %v645_v5  ;;  %v224_v16 = vrot.slane %v218_v12, %v642_v4  ;;  %v259_v17 = vrot.slane %v258_v15, 4 }
  0x16   : > { %v228_v18 = vrot.slane %v218_v12, %v645_v5  ;;  %v253_v20 = vmax.f32 %v251_v9, %v252_v11 }
  0x17   : > { %vm239_vm3 = vcmp.eq.s32.totalorder %v234_v13, 1  ;;  %vm661_vm4 = vcmp.eq.s32.totalorder %v238_v14, 1  ;;  %vm229_vm5 = vcmp.eq.s32.totalorder %v623_v2, %v224_v16  ;;  %v260_v23 = vmax.f32 %v258_v15, %v259_v17 }
  0x18   : > { %v246_v21 = vsel %vm239_vm3, %v213_v6, 0.0  ;;  %v247_v22 = vsel %vm661_vm4, %v244_v8, 0.0  ;;  %vm230_vm6 = vcmp.eq.s32.totalorder %v623_v2, %v228_v18  ;;  %vm241_vm7 = vmand %vm229_vm5, %vm239_vm3  ;;  %v254_v38 = vrot.slane %v253_v20, 2 }
  0x19   : > { %v336_v24 = vmul.f32 %v246_v21, %v246_v21  ;;  %v337_v25 = vmul.f32 %v247_v22, %v247_v22  ;;  %vm242_vm8 = vmand %vm230_vm6, %vm661_vm4  ;;  %v512_v26 = vsel %vm241_vm7, 1.0, %v587_v3  ;;  %v248_v27 = vsel %vm241_vm7, %v246_v21, 0.0  ;;  %v335_v21 = vld [vmem:[#allocation3] sm:$0xf] }
  0x1a   : > { %v261_v28 = vrot.slane %v260_v23, 2  ;;  %v513_v29 = vsel %vm242_vm8, 1.0, %v587_v3  ;;  %v350_v30 = vsel %vm250_vm1, %v512_v26, 0.0  ;;  %v249_v31 = vsel %vm242_vm8, %v247_v22, 0.0 }
  0x1b   : > { %v338_v32 = vsel %vm250_vm1, %v336_v24, 0.0  ;;  %v339_v33 = vsel %vm250_vm1, %v337_v25, 0.0  ;;  %v351_v34 = vsel %vm250_vm1, %v513_v29, 0.0  ;;  %v327_v35 = vsel %vm250_vm1, %v248_v27, 0.0  ;;  %v345_v25 = vld [vmem:[#allocation4] sm:$0xf] }
  0x1c   : > { %v340_v36 = vadd.f32 %v339_v33, %v338_v32  ;;  %v328_v37 = vsel %vm250_vm1, %v249_v31, 0.0  ;;  %v262_v40 = vmax.f32 %v260_v23, %v261_v28  ;;  %v352_v41 = vadd.f32 %v351_v34, %v350_v30 }
  0x1d   : > { %v329_v39 = vadd.f32 %v328_v37, %v327_v35  ;;  %v255_v42 = vmax.f32 %v253_v20, %v254_v38 }
  0x1e   : > { %341 = vadd.xlane.f32.xlu0 %v340_v36  ;;  %v263_v43 = vrot.slane %v262_v40, 1 }
  0x1f   : > { %330 = vadd.xlane.f32.xlu1 %v329_v39  ;;  %v256_v44 = vrot.slane %v255_v42, 1 }
  0x20   : > { %v264_v45 = vmax.f32 %v262_v40, %v263_v43 }
  0x21   : > { %v257_v46 = vmax.f32 %v255_v42, %v256_v44 }
  0x22   : > { %353 = vadd.xlane.f32.xlu0 %v352_v41 }
  0x23   : > { %v267_v47 = vcombine.low %v257_v46, %v264_v45 }
  0x25   : > { %v269_v48 = vsub.f32 %v213_v6, %v267_v47  ;;  %v511_v6 = vsel %vm215_vm2, 1.0, %v587_v3 }
  0x26   : > { %v300_v10 = vrot.slane %v511_v6, %v642_v4  ;;  %v304_v14 = vrot.slane %v511_v6, %v645_v5 }
  0x27   : > { %v270_v49 = vmul.f32 1.442695, %v269_v48 }
  0x29   : > { %554 = vpow2.f32 %v270_v49 }
  0x33   : > { %v555_v50 = vpop.eup %554 }
  0x34   : > { %v273_v51 = vcombine.high %v555_v50, %v555_v50  ;;  %v275_v52 = vsel %vm250_vm1, %v555_v50, 0.0 }
  0x35   : > { %v276_v53 = vrot.slane %v275_v52, 4 }
  0x36   : > { %v282_v54 = vsel %vm250_vm1, %v273_v51, 0.0 }
  0x37   : > { %v277_v55 = vadd.f32 %v276_v53, %v275_v52  ;;  %v283_v56 = vrot.slane %v282_v54, 4 }
  0x39   : > { %v278_v57 = vrot.slane %v277_v55, 2  ;;  %v284_v58 = vadd.f32 %v283_v56, %v282_v54 }
  0x3b   : > { %v279_v59 = vadd.f32 %v278_v57, %v277_v55  ;;  %v285_v60 = vrot.slane %v284_v58, 2 }
  0x3d   : > { %v280_v61 = vrot.slane %v279_v59, 1  ;;  %v286_v62 = vadd.f32 %v285_v60, %v284_v58 }
  0x3f   : > { %v281_v63 = vadd.f32 %v280_v61, %v279_v59  ;;  %v287_v0 = vrot.slane %v286_v62, 1 }
  0x41   : > { %v288_v1 = vadd.f32 %v287_v0, %v286_v62  ;;  %556 = vlog2.f32 %v281_v63 }
  0x43   : > { %558 = vlog2.f32 %v288_v1 }
  0x4b   : > { %v557_v8 = vpop.eup %556 }
  0x4c   : > { %v290_v9 = vmul.f32 0.6931472, %v557_v8 }
  0x4d   : > { %v559_v11 = vpop.eup %558 }
  0x4e   : > { %v292_v12 = vmul.f32 0.6931472, %v559_v11  ;;  %v293_v13 = vadd.f32 %v290_v9, %v257_v46  ;;  %v295_v46 = vld [vmem:[#allocation5] sm:$0x1] }
  0x50   : > { %v294_v15 = vadd.f32 %v292_v12, %v264_v45  ;;  %v307_v16 = vmul.f32 %v300_v10, %v293_v13 }
  0x52   : > { %v308_v17 = vmul.f32 %v304_v14, %v294_v15  ;;  %v310_v18 = vsel %vm309_vm9, %v307_v16, 0.0 }
  0x54   : > { %v311_v19 = vsel %vm309_vm9, %v308_v17, 0.0 }
  0x55   : > { %v312_v20 = vadd.f32 %v311_v19, %v310_v18 }
  0x57   : > { %313 = vadd.xlane.f32.xlu1 %v312_v20 }
  0xab   : > { %v342_v22 = vpop.xlane.xlu0 %341 }
  0xac   : > { %v343_v23 = vadd.f32 %v342_v22, %v335_v21  ;;  %v331_v24 = vpop.xlane.xlu1 %330 }
  0xad   : > { %v332_v26 = vadd.f32 %v331_v24, %v326_v7 }
  0xae   : > { %344 = vst.msk [vmem:[#allocation3] sm:$0xf] %vm207_vm0, %v343_v23 }
  0xaf   : > { %v354_v27 = vpop.xlane.xlu0 %353  ;;  %334 = vst.msk [vmem:[#allocation2] sm:$0xf] %vm207_vm0, %v332_v26 }
  0xb0   : > { %v355_v5 = vadd.f32 %v354_v27, %v345_v25 }
  0xb2   : > { %356 = vst.msk [vmem:[#allocation4] sm:$0xf] %vm207_vm0, %v355_v5 }
  0xb5   : > { %v362_v30 = vld [vmem:[#allocation3] sm:$0xf] }
  0xb6   : > { %v360_v28 = vld [vmem:[#allocation2] sm:$0xf] }
  0xb7   : > { %v380_v29 = vsel %vm207_vm0, %v360_v28, 0.0  ;;  %v361_v34 = vmul.f32 2.0, %v360_v28 }
  0xb8   : > { %381 = vadd.xlane.f32.xlu1 %v380_v29 }
  0xb9   : > { %v363_v31 = vld [vmem:[#allocation4] sm:$0xf] }
  0xba   : > { %v364_v32 = vadd.f32 %v363_v31, %v362_v30  ;;  %v392_v38 = vsel %vm207_vm0, %v363_v31, 0.0 }
  0xbc   : > { %v365_v33 = vadd.f32 1e-12, %v364_v32 }
  0xbe   : > { %560 = vrcp.f32 %v365_v33 }
  0xc8   : > { %v561_v35 = vpop.eup %560 }
  0xc9   : > { %v367_v36 = vmul.f32 %v561_v35, %v361_v34 }
  0xcb   : > { %v368_v37 = vsel %vm207_vm0, %v367_v36, 0.0 }
  0xcc   : > { %369 = vadd.xlane.f32.xlu0 %v368_v37 }
  0xd0   : > { %393 = vadd.xlane.f32.xlu0 %v392_v38 }
  0xe4   : > { %v314_v39 = vpop.xlane.xlu1 %313 }
  0xe5   : > { %v315_v40 = vrot.slane %v314_v39, 4 }
  0xe7   : > { %v316_v41 = vadd.f32 %v315_v40, %v314_v39 }
  0xe9   : > { %v317_v42 = vrot.slane %v316_v41, 2 }
  0xeb   : > { %v318_v43 = vadd.f32 %v317_v42, %v316_v41 }
  0xed   : > { %v319_v44 = vrot.slane %v318_v43, 1 }
  0xef   : > { %v320_v45 = vadd.f32 %v319_v44, %v318_v43 }
  0xf1   : > { %517 = vpush %v320_v45 }
 0x122   : > { %s518_s21 = spop %517 }
 0x123   : > { %v322_v47 = vstv %s518_s21 }
 0x124   : > { %v323_v48 = vadd.f32 %v322_v47, %v295_v46 }
 0x126   : > { %325 = vst.msk [vmem:[#allocation5] sm:$0x1] %vm211_vm10, %v323_v48 }
 0x12d   : > { %v379_v10 = vld [vmem:[#allocation5] sm:$0x1] }
 0x145   : > { %v382_v49 = vpop.xlane.xlu1 %381 }
 0x146   : > { %v383_v50 = vrot.slane %v382_v49, 4 }
 0x148   : > { %v384_v51 = vadd.f32 %v383_v50, %v382_v49 }
 0x14a   : > { %v385_v52 = vrot.slane %v384_v51, 2 }
 0x14c   : > { %v386_v57 = vadd.f32 %v385_v52, %v384_v51 }
 0x14e   : > { %v387_v61 = vrot.slane %v386_v57, 1 }
 0x150   : > { %v388_v6 = vadd.f32 %v387_v61, %v386_v57 }
 0x159   : > { %v370_v53 = vpop.xlane.xlu0 %369 }
 0x15a   : > { %v371_v54 = vrot.slane %v370_v53, 4 }
 0x15c   : > { %v372_v55 = vadd.f32 %v371_v54, %v370_v53 }
 0x15d   : > { %v394_v56 = vpop.xlane.xlu0 %393 }
 0x15e   : > { %v373_v58 = vrot.slane %v372_v55, 2  ;;  %v395_v3 = vrot.slane %v394_v56, 4 }
 0x160   : > { %v396_v59 = vadd.f32 %v395_v3, %v394_v56  ;;  %v374_v60 = vadd.f32 %v373_v58, %v372_v55 }
 0x162   : > { %v397_v62 = vrot.slane %v396_v59, 2  ;;  %v375_v63 = vrot.slane %v374_v60, 1 }
 0x164   : > { %v398_v0 = vadd.f32 %v397_v62, %v396_v59  ;;  %v376_v1 = vadd.f32 %v375_v63, %v374_v60 }
 0x166   : > { %519 = vpush %v376_v1  ;;  %v399_v8 = vrot.slane %v398_v0, 1 }
 0x167   : > { %521 = vpush %v388_v6 }
 0x168   : > { %v400_v9 = vadd.f32 %v399_v8, %v398_v0 }
 0x16a   : > { %523 = vpush %v400_v9 }
 0x197   : > { %s520_s22 = spop %519 }
 0x198   : > { %s522_s23 = spop %521  ;;  %s378_s25 = smul.f32 0.25, %s520_s22 }
 0x199   : > { %v390_v11 = vstv %s522_s23 }
 0x19a   : > { %v391_v12 = vsub.f32 %v379_v10, %v390_v11  ;;  %v417_v17 = vstv %s378_s25 }
 0x19b   : > { %s524_s24 = spop %523 }
 0x19c   : > { %v411_v13 = vrot.slane %v391_v12, %v642_v4  ;;  %v405_v14 = vstv %s524_s24 }
 0x19d   : > { %v406_v15 = vsel %vm404_vm11, %v405_v14, 0.0 }
 0x19e   : > { %413 = vperm.xlu1 %551, %v411_v13  }
 0x21d   : > { %v414_v16 = vpop.permute.xlu1 %413 }
 0x21e   : > { %v416_v18 = vsel %vm403_vm12, %v414_v16, %v406_v15 }
 0x21f   : > { %v418_v4 = vsel %vm402_vm13, %v417_v17, %v416_v18 }
 0x220   : > { %419 = vst [vmem:[%s202_s28] sm:$0xff] %v418_v4 }
 0x221 PF: > { %s12_s11 = sadd.s32 1, %s584_s11   ;;  %s716_s9 = smov %s580_s10 }
 0x222   : > { %p9_p5 = scmp.ge.s32.totalorder %s12_s11, 4   ;;  %s717_s10 = smov %s719_s12 }
 0x224   :  { %11 = sbr.rel (!%p9_p5) target bundleno = 2 (0x2), region = 69 }

</bundles_post_ra>
